<compile_context>
chip_gen: v7x
topology: tpu7x:2x2x1
jax: 0.10.0
libtpu: 0.0.40
codegen_flags: <defaults>
</compile_context>

<pallas_src>
import functools

import jax
import jax.numpy as jnp
from jax.experimental import pallas as pl
from jax.experimental.pallas import tpu as pltpu

SUBLANE = 8  # f32 sublane height (second-last block dim granularity)


def _round_up(n, m):
    return ((n + m - 1) // m) * m


def mlp_kernel(x_ref, w1_ref, b1_ref, w2_ref, b2_ref, o_ref):
    """Fused Linear -> ReLU -> Linear -> Sigmoid on one (tm, In) batch tile."""
    x = x_ref[...]
    # First matmul on the MXU, f32 accumulation; bias add + ReLU in f32 on the VPU.
    h = jnp.dot(x, w1_ref[...], preferred_element_type=jnp.float32) + b1_ref[...]
    h = jnp.maximum(h, 0.0)
    # Second matmul: feed the MXU in the weight dtype (bf16 when bf16 weights
    # are supplied), keep f32 accumulation and an f32 epilogue.
    logits = jnp.dot(h.astype(w2_ref.dtype), w2_ref[...],
                     preferred_element_type=jnp.float32) + b2_ref[...]
    o_ref[...] = jax.nn.sigmoid(logits).astype(o_ref.dtype)  # EUP sigmoid


@functools.partial(jax.jit, static_argnames=("block_m",))
def simple_mlp_forward(x, w1, b1, w2, b2, *, block_m=8192):
    """x: [B, In]; w1: [In, H]; b1: [H] or [1, H]; w2: [H, C]; b2: [C] or [1, C].

    Returns [B, C] in x.dtype.  block_m is the max batch-tile height (multiple
    of 8); sweep 2048-8192 per generation.
    """
    assert block_m % SUBLANE == 0, "block_m must be a multiple of 8"
    B, In = x.shape
    H = w1.shape[1]
    C = w2.shape[1]
    b1 = b1.reshape(1, H)
    b2 = b2.reshape(1, C)

    # Tile height: as large as block_m allows, but capped so the grid has
    # >= ~4 steps for large B (shards the "parallel" batch axis across both
    # v7x TensorCores); always a multiple of the 8-row sublane granularity.
    tm = min(block_m, max(SUBLANE, _round_up(pl.cdiv(B, 4), SUBLANE)))
    grid = (pl.cdiv(B, tm),)  # partial last block handled by Pallas OOB masking

    return pl.pallas_call(
        mlp_kernel,
        out_shape=jax.ShapeDtypeStruct((B, C), x.dtype),
        grid=grid,
        in_specs=[
            # x: tiled along batch, full (unpadded) feature width.
            pl.BlockSpec((tm, In), lambda i: (i, 0)),
            # Weights / biases: full-dim blocks, VMEM-resident across grid steps.
            pl.BlockSpec((In, H), lambda i: (0, 0)),
            pl.BlockSpec((1, H), lambda i: (0, 0)),
            pl.BlockSpec((H, C), lambda i: (0, 0)),
            pl.BlockSpec((1, C), lambda i: (0, 0)),
        ],
        out_specs=pl.BlockSpec((tm, C), lambda i: (i, 0)),
        compiler_params=pltpu.CompilerParams(
            dimension_semantics=("parallel",),  # batch axis -> both TCs on v7x
        ),
    )(x, w1, b1, w2, b2)


def init_params(key, input_size, hidden_size, num_classes):
    """Deterministic PyTorch-style Linear init (uniform +-1/sqrt(fan_in))."""
    k1, k2, k3, k4 = jax.random.split(key, 4)
    bound1 = 1.0 / jnp.sqrt(input_size)
    bound2 = 1.0 / jnp.sqrt(hidden_size)
    # Stored as [in, out] (transposed vs. torch's [out, in]) for x @ W.
    w1 = jax.random.uniform(k1, (input_size, hidden_size), jnp.float32, -bound1, bound1)
    b1 = jax.random.uniform(k2, (1, hidden_size), jnp.float32, -bound1, bound1)
    w2 = jax.random.uniform(k3, (hidden_size, num_classes), jnp.float32, -bound2, bound2)
    b2 = jax.random.uniform(k4, (1, num_classes), jnp.float32, -bound2, bound2)
    return w1, b1, w2, b2


if __name__ == "__main__":
    input_size, hidden_size, num_classes = 32, 64, 16

    key = jax.random.PRNGKey(0)
    kx_small, kx_big, kp = jax.random.split(key, 3)
    w1, b1, w2, b2 = init_params(kp, input_size, hidden_size, num_classes)

    def ref_fwd(x):
        return jax.nn.sigmoid(jnp.maximum(x @ w1 + b1, 0.0) @ w2 + b2)

    # Small shape matching the module's intent (single grid step, no padding).
    x_small = jax.random.normal(kx_small, (8, input_size), jnp.float32)
    out_small = jax.block_until_ready(simple_mlp_forward(x_small, w1, b1, w2, b2))
    assert out_small.shape == (8, num_classes)
    assert jnp.allclose(out_small, ref_fwd(x_small), atol=1e-5, rtol=1e-5)

    # Larger batch not a multiple of the tile: exercises the cdiv grid with a
    # partial (masked) last block and a multi-step "parallel" batch axis.
    x_big = jax.random.normal(kx_big, (300, input_size), jnp.float32)
    out_big = jax.block_until_ready(simple_mlp_forward(x_big, w1, b1, w2, b2))
    assert out_big.shape == (300, num_classes)
    assert jnp.allclose(out_big, ref_fwd(x_big), atol=1e-5, rtol=1e-5)

    # End-to-end bf16 I/O path (caller supplies bf16 x / weights; f32 MXU
    # accumulation and f32 epilogue inside the kernel) — looser tolerance.
    out_bf16 = jax.block_until_ready(
        simple_mlp_forward(x_big.astype(jnp.bfloat16),
                           w1.astype(jnp.bfloat16), b1,
                           w2.astype(jnp.bfloat16), b2))
    assert out_bf16.dtype == jnp.bfloat16
    assert jnp.allclose(out_bf16.astype(jnp.float32), ref_fwd(x_big),
                        atol=2e-2, rtol=2e-2)

    print("KERNEL_OK")
</pallas_src>

<mosaic_0001>
module attributes {stable_mosaic.version = 11 : i64} {
  func.func @mlp_kernel(%arg0: i32, %arg1: memref<8x32xf32, #tpu.memory_space<vmem>>, %arg2: memref<32x64xf32, #tpu.memory_space<vmem>>, %arg3: memref<1x64xf32, #tpu.memory_space<vmem>>, %arg4: memref<64x16xf32, #tpu.memory_space<vmem>>, %arg5: memref<1x16xf32, #tpu.memory_space<vmem>>, %arg6: memref<8x16xf32, #tpu.memory_space<vmem>>) attributes {dimension_semantics = [#tpu.dimension_semantics<parallel>], iteration_bounds = array<i64: 1>, scalar_prefetch = 0 : i64, scratch_operands = 0 : i64, tpu.core_type = #tpu.core_type<tc>, window_params = [{transform_indices = @transform_0, window_bounds = array<i64: 8, 32>}, {pipeline_mode = #tpu.pipeline_mode<synchronous>, transform_indices = @transform_1, window_bounds = array<i64: 32, 64>}, {pipeline_mode = #tpu.pipeline_mode<synchronous>, transform_indices = @transform_2, window_bounds = array<i64: 1, 64>}, {pipeline_mode = #tpu.pipeline_mode<synchronous>, transform_indices = @transform_3, window_bounds = array<i64: 64, 16>}, {pipeline_mode = #tpu.pipeline_mode<synchronous>, transform_indices = @transform_4, window_bounds = array<i64: 1, 16>}, {transform_indices = @transform_5, window_bounds = array<i64: 8, 16>}]} {
    %c0 = arith.constant 0 : index
    %c0_0 = arith.constant 0 : index
    %0 = vector.load %arg1[%c0, %c0_0] : memref<8x32xf32, #tpu.memory_space<vmem>>, vector<8x32xf32>
    %c0_1 = arith.constant 0 : index
    %c0_2 = arith.constant 0 : index
    %1 = vector.load %arg2[%c0_1, %c0_2] : memref<32x64xf32, #tpu.memory_space<vmem>>, vector<32x64xf32>
    %cst = arith.constant dense<0.000000e+00> : vector<8x64xf32>
    %2 = tpu.matmul %0, %1, %cst {dimension_numbers = #tpu.dot_dimension_numbers<[1], [0], [0], [1], [0, 0, 1, 1], [], []>} : vector<8x32xf32>, vector<32x64xf32>, vector<8x64xf32> -> vector<8x64xf32>
    %c0_3 = arith.constant 0 : index
    %c0_4 = arith.constant 0 : index
    %3 = vector.load %arg3[%c0_3, %c0_4] : memref<1x64xf32, #tpu.memory_space<vmem>>, vector<1x64xf32>
    %4 = vector.broadcast %3 : vector<1x64xf32> to vector<8x64xf32>
    %5 = arith.addf %2, %4 : vector<8x64xf32>
    %cst_5 = arith.constant 0.000000e+00 : f32
    %6 = vector.broadcast %cst_5 : f32 to vector<8x64xf32>
    %7 = arith.maximumf %5, %6 : vector<8x64xf32>
    %c0_6 = arith.constant 0 : index
    %c0_7 = arith.constant 0 : index
    %8 = vector.load %arg4[%c0_6, %c0_7] : memref<64x16xf32, #tpu.memory_space<vmem>>, vector<64x16xf32>
    %cst_8 = arith.constant dense<0.000000e+00> : vector<8x16xf32>
    %9 = tpu.matmul %7, %8, %cst_8 {dimension_numbers = #tpu.dot_dimension_numbers<[1], [0], [0], [1], [0, 0, 1, 1], [], []>} : vector<8x64xf32>, vector<64x16xf32>, vector<8x16xf32> -> vector<8x16xf32>
    %c0_9 = arith.constant 0 : index
    %c0_10 = arith.constant 0 : index
    %10 = vector.load %arg5[%c0_9, %c0_10] : memref<1x16xf32, #tpu.memory_space<vmem>>, vector<1x16xf32>
    %11 = vector.broadcast %10 : vector<1x16xf32> to vector<8x16xf32>
    %12 = arith.addf %9, %11 : vector<8x16xf32>
    %13 = arith.negf %12 : vector<8x16xf32>
    %14 = math.exp %13 : vector<8x16xf32>
    %cst_11 = arith.constant 1.000000e+00 : f32
    %15 = vector.broadcast %cst_11 : f32 to vector<8x16xf32>
    %16 = arith.addf %15, %14 : vector<8x16xf32>
    %17 = arith.divf %15, %16 : vector<8x16xf32>
    %c0_12 = arith.constant 0 : index
    %c0_13 = arith.constant 0 : index
    %18 = vector.load %arg6[%c0_12, %c0_13] : memref<8x16xf32, #tpu.memory_space<vmem>>, vector<8x16xf32>
    tpu.vector_store %arg6[%c0_12, %c0_13], %17 {strides = array<i32>} : memref<8x16xf32, #tpu.memory_space<vmem>>, vector<8x16xf32>,
    return
  }
  func.func @transform_0(%arg0: i32) -> (i32, i32) {
    %c0_i32 = arith.constant 0 : i32
    %c0_i32_0 = arith.constant 0 : i32
    return %arg0, %c0_i32 : i32, i32
  }
  func.func @transform_1(%arg0: i32) -> (i32, i32) {
    %c0_i32 = arith.constant 0 : i32
    %c0_i32_0 = arith.constant 0 : i32
    %c0_i32_1 = arith.constant 0 : i32
    return %c0_i32, %c0_i32_0 : i32, i32
  }
  func.func @transform_2(%arg0: i32) -> (i32, i32) {
    %c0_i32 = arith.constant 0 : i32
    %c0_i32_0 = arith.constant 0 : i32
    %c0_i32_1 = arith.constant 0 : i32
    return %c0_i32, %c0_i32_0 : i32, i32
  }
  func.func @transform_3(%arg0: i32) -> (i32, i32) {
    %c0_i32 = arith.constant 0 : i32
    %c0_i32_0 = arith.constant 0 : i32
    %c0_i32_1 = arith.constant 0 : i32
    return %c0_i32, %c0_i32_0 : i32, i32
  }
  func.func @transform_4(%arg0: i32) -> (i32, i32) {
    %c0_i32 = arith.constant 0 : i32
    %c0_i32_0 = arith.constant 0 : i32
    %c0_i32_1 = arith.constant 0 : i32
    return %c0_i32, %c0_i32_0 : i32, i32
  }
  func.func @transform_5(%arg0: i32) -> (i32, i32) {
    %c0_i32 = arith.constant 0 : i32
    %c0_i32_0 = arith.constant 0 : i32
    return %arg0, %c0_i32 : i32, i32
  }
}

</mosaic_0001>

<bundles_post_ra>
// kernel: simple_mlp_forward.1
= control target key start
LH: loop header
LB: loop body
LE: loop exit
PB: predicated region body
PF: predicated region fallthrough
CT: control target
= control target key end

     0   :  { %v318_v3 = vmov 0.0|0.0   ;;  %vm319_vm0 = vmmov 0   ;;  %v320_v6 = vmov 0.0   ;;  %s409_s0 = inlined_call_operand.vmem [shape: f32[8,32], index: 0, kind: input, shape index: {}]   ;;  %s410_s1 = inlined_call_operand.vmem [shape: f32[32,64], index: 1, kind: input, shape index: {}]   ;;  %s411_s2 = inlined_call_operand.vmem [shape: f32[1,64], index: 2, kind: input, shape index: {}]   ;;  %s412_s3 = inlined_call_operand.vmem [shape: f32[64,16], index: 3, kind: input, shape index: {}]   ;;  %s413_s4 = inlined_call_operand.vmem [shape: f32[1,16], index: 4, kind: input, shape index: {}]   ;;  %s414_s5 = inlined_call_operand.hbm [shape: f32[8,16], index: 5, kind: output, shape index: {}]  }
   0x1   :  { %v22_v0 = vld [vmem:[%s410_s1] sm:$0xff]  ;;  %v23_v1 = vld [vmem:[%s410_s1 + $0x8] sm:$0xff]  ;;  %v24_v2 = vld [vmem:[%s410_s1 + $0x10] sm:$0xff]  ;;  %268 = vmatprep.subr.bf16.mxu0 %v318_v3  ;;  %246 = vmatprep.mubr.msk.f32.mxu0 %vm319_vm0, %v320_v6 }
   0x2   :  { %v269_v4 = vpack.c.bf16 %v23_v1, %v22_v0  ;;  %v25_v5 = vld [vmem:[%s410_s1 + $0x18] sm:$0xff]  ;;  %v108_v7 = vld [vmem:[%s412_s3] sm:$0xff]  ;;  %274 = vmatprep.subr.bf16.mxu1 %v318_v3  ;;  %v109_v8 = vld [vmem:[%s412_s3 + $0x8] sm:$0xff]  ;;  %265 = vmatprep.mubr.msk.f32.mxu1 %vm319_vm0, %v320_v6 }
   0x3   :  { %v110_v9 = vld [vmem:[%s412_s3 + $0x10] sm:$0xff]  ;;  %v111_v10 = vld [vmem:[%s412_s3 + $0x18] sm:$0xff]  ;;  %v272_v11 = vpack.c.bf16 %v25_v5, %v24_v2  ;;  %v275_v12 = vpack.c.bf16 %v109_v8, %v108_v7 }
   0x4   :  { %270 = vmatpush3.bf16.msra.mxu0 %v269_v4 }
   0x5   :  { %271 = vmatprep.subr.bf16.mxu0 %v318_v3 }
   0x6   :  { %10 = vsyncpa [#allocation3], 0  ;;  %276 = vmatpush3.bf16.msra.mxu1 %v275_v12  ;;  %v278_v13 = vpack.c.bf16 %v111_v10, %v110_v9  ;;  %v112_v14 = vld [vmem:[%s412_s3 + $0x20] sm:$0xff]  ;;  %v113_v15 = vld [vmem:[%s412_s3 + $0x28] sm:$0xff]  ;;  %vm33_vm1 = vcmask 261120   ;;  %vm123_vm2 = vcmask 523264  }
   0x7   :  { %277 = vmatprep.subr.bf16.mxu1 %v318_v3  ;;  %v21_v16 = vld [vmem:[%s409_s0] sm:$0xff]  ;;  %v281_v17 = vpack.c.bf16 %v113_v15, %v112_v14  ;;  %v114_v18 = vld [vmem:[%s412_s3 + $0x30] sm:$0xff]  ;;  %v115_v19 = vld [vmem:[%s412_s3 + $0x38] sm:$0xff]  ;;  %s321_s3 = smov [#allocation2]   ;;  %vm203_vm3 = vcmask 130048  }
   0x8   :  { %273 = vmatpush3.bf16.msra.mxu0 %v272_v11  ;;  %v284_v20 = vpack.c.bf16 %v115_v19, %v114_v18  ;;  %v219_v21 = vld [vmem:[%s411_s2] ss:$0 sm:$0xff]  ;;  %s211_s2 = sshll.u32 %s321_s3, 4  ;;  %s212_s2 = int_to_ptr.vmem [resolvable:$true] %s211_s2 }
   0x9   :  { %v221_v26 = vld [vmem:[%s413_s4] ss:$0 sm:$0xff]  ;;  %s294_s21 = scalar_lea.vmem %s212_s2, 128  ;;  %p299_p1 = scmp.lt.s32.totalorder %s212_s2, %s212_s2 }
   0xa   :  { %279 = vmatpush3.bf16.msra.mxu1 %v278_v13  ;;  %p295_p0 = scmp.ne.s32.totalorder %s212_s2, %s294_s21  ;;  %p300_p2 = scmp.lt.s32.totalorder %s294_s21, %s294_s21 }
   0xb   :  { %247 = vmatmul.mubr.msk.f32.vlgmr.msra.gmra.mrb[0].mxu0 %vm33_vm1, %v21_v16  ;;  %280 = vmatprep.subr.bf16.mxu1 %v318_v3 }
   0xc   :  { %p301_p3 = por %p300_p2, %p299_p1 }
   0xe   :  { %282 = vmatpush3.bf16.msra.mxu1 %v281_v17  ;;  %p302_p4 = pnand %p301_p3, %p295_p0 }
   0xf   :  { %283 = vmatprep.subr.bf16.mxu1 %v318_v3 }
  0x12   :  { %285 = vmatpush3.bf16.msra.mxu1 %v284_v20 }
  0xde   :  { %v103_v22 = vpop.f32.mrb[0].mxu0 }
  0xdf   :  { %v104_v23 = vadd.f32 %v219_v21, %v103_v22  ;;  %v248_v24 = vpop.f32.mrb[1].mxu0 }
  0xe1   :  { %v107_v25 = vmax.f32 %v104_v23, 0.0 }
  0xe3   :  { %266 = vmatmul.mubr.msk.f32.vlgmr.msra.gmra.mrb[0].mxu1 %vm123_vm2, %v107_v25 }
 0x1b6   :  { %v193_v27 = vpop.f32.mrb[0].mxu1 }
 0x1b7   :  { %v194_v28 = vadd.f32 %v221_v26, %v193_v27  ;;  %v267_v29 = vpop.f32.mrb[1].mxu1 }
 0x1b9   :  { %v223_v30 = vmul.f32 -1.442695, %v194_v28 }
 0x1bb   :  { %290 = vpow2.f32 %v223_v30 }
 0x1c5   :  { %v291_v31 = vpop.eup %290 }
 0x1c6   :  { %v200_v32 = vadd.f32 1.0, %v291_v31 }
 0x1c8   :  { %292 = vrcp.f32 %v200_v32 }
 0x1d2   :  { %v293_v33 = vpop.eup %292 }
 0x1d3   :  { %204 = vst.msk [vmem:[#allocation2] sm:$0xff] %vm203_vm3, %v293_v33 }
 0x1d4   :  { %305 = shalt.err (!%p302_p4)
}
 0x1d5   :  { %s306_s23 = scalar_lea.hbm %s414_s5, 128 }
 0x1d6   :  { %p307_p5 = scmp.ne.s32.totalorder %s414_s5, %s306_s23  ;;  %p310_p6 = scmp.lt.u32.totalorder %s306_s23, %s414_s5 }
 0x1d8   :  { %p312_p7 = pnand %p310_p6, %p307_p5 }
 0x1da   :  { %315 = shalt.err (!%p312_p7)
}
 0x1db   :  { %214 = dma.vmem_to_hbm [thread:$0]  %s212_s2, 128, %s414_s5, [#allocation3]  }
 0x1dc   :  { %316 = dma.done.wait [#allocation3], 128  }
 0x1dd   :  { %317 = vsyncadd [#allocation3], 4294967168 }
 0x1de   :  { %218 = vsyncpa [#allocation3], 1 }

</bundles_post_ra>
